<compile_context>
chip_gen: v5e
topology: v5e:2x2
jax: 0.10.0
libtpu: 0.0.40
codegen_flags: <defaults>
</compile_context>

<pallas_src>
import functools

import jax
import jax.numpy as jnp
from jax.experimental import pallas as pl
from jax.experimental.pallas import tpu as pltpu

HIDDEN = 128   # fc1 output features
NCLASS = 2     # fc2 output features

_STEP_OVERHEAD_S = 0.35e-6   # measured per-grid-step pipeline overhead
_NOMINAL_HBM_BPS = 1.2e12    # nominal HBM bandwidth, only used to rank tiles


def _disc_kernel(x_ref, w1_ref, b1_ref, w2_ref, b2_ref, o_ref, acc_ref):
    """Grid = (batch tiles, K tiles).  Axis 1 tiles the fc1 reduction dim K.

    acc_ref : VMEM f32 (tile_b, HIDDEN) accumulator for fc1.
    On the last K tile we finish fc1 (+bias, ReLU), run the tiny fc2 matmul
    and the log-softmax, and write the (tile_b, NCLASS) output block.
    """
    k = pl.program_id(1)

    @pl.when(k == 0)
    def _():
        acc_ref[...] = jnp.zeros_like(acc_ref)

    # fc1 partial product for this K tile.  x is cast to the (bf16) weight
    # dtype so the MXU runs a native bf16 x bf16 -> f32 matmul.  (If x is
    # already bf16 the astype is a no-op.)
    acc_ref[...] += jnp.dot(
        x_ref[...].astype(w1_ref.dtype),
        w1_ref[...],
        preferred_element_type=jnp.float32,
    )

    @pl.when(k == pl.num_programs(1) - 1)
    def _():
        # fc1 bias + ReLU (f32)
        h = jnp.maximum(acc_ref[...] + b1_ref[...], 0.0)
        # fc2 (tiny, f32)
        logits = jnp.dot(h, w2_ref[...], preferred_element_type=jnp.float32)
        logits = logits + b2_ref[...]
        # LogSoftmax over dim=1 (the class dim)
        m = jnp.max(logits, axis=-1, keepdims=True)
        lse = m + jnp.log(jnp.sum(jnp.exp(logits - m), axis=-1, keepdims=True))
        o_ref[...] = (logits - lse).astype(o_ref.dtype)


def _vmem_capacity_bytes():
    """Physical VMEM of the current generation; conservative 64 MiB fallback."""
    try:
        cap = getattr(pltpu.get_tpu_info(), "vmem_capacity_bytes", None)
        if cap:
            return int(cap)
    except Exception:
        pass
    return 64 * 2 ** 20   # v7x-safe default


def _divisor_tiles(dim, align, cap):
    """Multiples of `align` that divide `dim` and are <= cap, descending.

    Falls back to [dim] (a full-extent block is always legal)."""
    cand = [t for t in range(align, min(dim, cap) + 1, align) if dim % t == 0]
    return sorted(cand, reverse=True) if cand else [dim]


def _footprint_bytes(tile_b, tile_k, x_itemsize, w1_itemsize, cast_temp):
    """Double-buffered VMEM footprint of one tiling configuration."""
    f = 2 * tile_b * tile_k * x_itemsize        # x tile (double buffered)
    f += 2 * tile_k * HIDDEN * w1_itemsize      # fc1 weight tile (double buffered)
    if cast_temp:
        f += tile_b * tile_k * 2                # in-kernel bf16 cast of the x tile
    f += tile_b * HIDDEN * 4                    # f32 fc1 accumulator scratch
    f += 2 * tile_b * 128 * 4                   # output block (lane-padded, dbl buf)
    f += 512 * 1024                             # biases / fc2 blocks + slack
    return f


def _pick_tiles(Bp, K, x_itemsize, w1_itemsize, cast_temp, budget,
                tile_k_max, tile_b_max):
    """Pick (tile_b, tile_k) minimizing HBM traffic + per-step overhead,
    subject to the double-buffered VMEM footprint fitting `budget`.

    The traffic model charges W1 once per batch tile (it is re-streamed when
    nb > 1 because the K axis is innermost), so the search naturally prefers a
    full-batch tile when it fits, and otherwise trades tile_b against tile_k.
    """
    tb_cands = _divisor_tiles(Bp, 8, min(Bp, tile_b_max))
    tk_cands = _divisor_tiles(K, 128, min(K, tile_k_max))
    best, best_cost = None, None
    fallback, fallback_fp = None, None
    for tb in tb_cands:
        nb = Bp // tb
        for tk in tk_cands:
            nk = K // tk
            fp = _footprint_bytes(tb, tk, x_itemsize, w1_itemsize, cast_temp)
            if fallback is None or fp < fallback_fp:
                fallback, fallback_fp = (tb, tk), fp
            if fp > budget:
                continue
            hbm_bytes = Bp * K * x_itemsize + nb * K * HIDDEN * w1_itemsize
            cost = hbm_bytes / _NOMINAL_HBM_BPS + nb * nk * _STEP_OVERHEAD_S
            if best is None or cost < best_cost:
                best, best_cost = (tb, tk), cost
    return best if best is not None else fallback


@functools.partial(jax.jit, static_argnames=("tile_k_max", "tile_b_max"))
def discriminator_forward(x, grl_lambda, w1, b1, w2, b2, *,
                          tile_k_max=32768, tile_b_max=256):
    """x: (B, C, H, W).  Returns log-softmax domain logits of shape (B, 2).

    grl_lambda is unused in the forward pass (GradientReversal is identity).
    """
    del grl_lambda
    # TODO(synk): GradientReversal backward (-grl_lambda * grad) would need a
    # custom_vjp for DANN-style training; only the forward pass is implemented.
    B = x.shape[0]
    K = 1
    for d in x.shape[1:]:
        K *= d
    x2d = x.reshape(B, K)                        # same as torch .view(-1, K)

    # Pad B up to a sublane multiple so block shapes stay (8,128)-aligned and
    # the VMEM footprint stays predictable for ragged batch sizes.
    Bp = ((B + 7) // 8) * 8
    if Bp != B:
        x2d = jnp.pad(x2d, ((0, Bp - B), (0, 0)))

    x_itemsize = jnp.dtype(x2d.dtype).itemsize
    w1_itemsize = jnp.dtype(w1.dtype).itemsize
    cast_temp = x2d.dtype != w1.dtype            # in-kernel astype temporary

    # Generation-aware VMEM budget: 75% of physical VMEM
    #   v7x (64 MiB)  -> 48 MiB ; v5e/v6e (128 MiB) -> 96 MiB.
    vmem_cap = _vmem_capacity_bytes()
    budget = (vmem_cap * 3) // 4

    tile_b, tile_k = _pick_tiles(Bp, K, x_itemsize, w1_itemsize, cast_temp,
                                 budget, tile_k_max, tile_b_max)
    nb = Bp // tile_b
    nk = K // tile_k

    need = _footprint_bytes(tile_b, tile_k, x_itemsize, w1_itemsize, cast_temp)
    vmem_limit = need + 4 * 2 ** 20              # footprint + headroom
    vmem_limit = max(vmem_limit, 32 * 2 ** 20)
    vmem_limit = int(min(vmem_limit, vmem_cap - 2 * 2 ** 20))

    b1_2d = b1.reshape(1, HIDDEN).astype(jnp.float32)
    b2_2d = b2.reshape(1, NCLASS).astype(jnp.float32)
    w2_f32 = w2.astype(jnp.float32)

    grid_spec = pltpu.PrefetchScalarGridSpec(
        num_scalar_prefetch=0,
        grid=(nb, nk),
        in_specs=[
            pl.BlockSpec((tile_b, tile_k), lambda b, k: (b, k)),     # x tile
            pl.BlockSpec((tile_k, HIDDEN), lambda b, k: (k, 0)),     # fc1 weight
            pl.BlockSpec((1, HIDDEN), lambda b, k: (0, 0)),          # fc1 bias
            pl.BlockSpec((HIDDEN, NCLASS), lambda b, k: (0, 0)),     # fc2 weight
            pl.BlockSpec((1, NCLASS), lambda b, k: (0, 0)),          # fc2 bias
        ],
        out_specs=pl.BlockSpec((tile_b, NCLASS), lambda b, k: (b, 0)),
        scratch_shapes=[pltpu.VMEM((tile_b, HIDDEN), jnp.float32)],
    )

    out = pl.pallas_call(
        _disc_kernel,
        out_shape=jax.ShapeDtypeStruct((Bp, NCLASS), x.dtype),
        grid_spec=grid_spec,
        compiler_params=pltpu.CompilerParams(
            # With nb == 1 (the common case) the batch axis is size-1, so the
            # kernel stays single-TC and W1 streams from HBM exactly once.
            # When nb > 1, batch sharding does not add W1 traffic (it is
            # re-streamed per batch tile either way) and it splits the then-
            # dominant x stream across cores.
            dimension_semantics=("parallel", "arbitrary"),
            vmem_limit_bytes=vmem_limit,
        ),
    )(x2d, w1, b1_2d, w2_f32, b2_2d)

    return out[:B] if Bp != B else out


def _init_params(key, in_features):
    """Deterministic init mimicking nn.Linear's U(-1/sqrt(fan_in), +).

    fc1's weight is stored bf16 in (in, out) layout so the kernel streams half
    the bytes (the dominant HBM cost) and computes x @ W directly.
    """
    k1, k2, k3, k4 = jax.random.split(key, 4)
    lim1 = 1.0 / jnp.sqrt(in_features)
    lim2 = 1.0 / jnp.sqrt(HIDDEN)
    w1 = jax.random.uniform(k1, (in_features, HIDDEN), jnp.float32, -lim1, lim1)
    w1 = w1.astype(jnp.bfloat16)          # streamed weight (bandwidth win)
    b1 = jax.random.uniform(k2, (HIDDEN,), jnp.float32, -lim1, lim1)
    w2 = jax.random.uniform(k3, (HIDDEN, NCLASS), jnp.float32, -lim2, lim2)
    b2 = jax.random.uniform(k4, (NCLASS,), jnp.float32, -lim2, lim2)
    return w1, b1, w2, b2


def _reference(x, w1, b1, w2, b2):
    """f32 reference mirroring the kernel's bf16-input / f32-accumulate fc1."""
    B = x.shape[0]
    x2d = x.reshape(B, -1).astype(w1.dtype).astype(jnp.float32)
    h = jnp.maximum(x2d @ w1.astype(jnp.float32) + b1, 0.0)
    logits = h @ w2 + b2
    return jax.nn.log_softmax(logits, axis=1)


if __name__ == "__main__":
    key = jax.random.PRNGKey(0)
    kx, kp = jax.random.split(key)

    # Small shapes consistent with the forward: x is NCHW, flattened to (B, K).
    # (The original module hard-codes K = 64*128*256; we use K = 2048 here.)
    B, C, H, W = 2, 4, 16, 32
    x = jax.random.normal(kx, (B, C, H, W), jnp.float32)
    grl_lambda = 1.0                       # forward-pass identity

    w1, b1, w2, b2 = _init_params(kp, C * H * W)

    out = discriminator_forward(x, grl_lambda, w1, b1, w2, b2)
    out = jax.block_until_ready(out)

    ref = _reference(x, w1, b1, w2, b2)
    assert out.shape == (B, NCLASS)
    assert jnp.allclose(out, ref, atol=5e-4, rtol=5e-4), (out, ref)

    print("KERNEL_OK")
</pallas_src>

<mosaic_0001>
module attributes {stable_mosaic.version = 11 : i64} {
  func.func @_disc_kernel(%arg0: i32, %arg1: i32, %arg2: memref<8x2048xf32, #tpu.memory_space<vmem>>, %arg3: memref<2048x128xbf16, #tpu.memory_space<vmem>>, %arg4: memref<1x128xf32, #tpu.memory_space<vmem>>, %arg5: memref<128x2xf32, #tpu.memory_space<vmem>>, %arg6: memref<1x2xf32, #tpu.memory_space<vmem>>, %arg7: memref<8x2xf32, #tpu.memory_space<vmem>>, %arg8: memref<8x128xf32, #tpu.memory_space<vmem>>) attributes {dimension_semantics = [#tpu.dimension_semantics<parallel>, #tpu.dimension_semantics<arbitrary>], iteration_bounds = array<i64: 1, 1>, scalar_prefetch = 0 : i64, scratch_operands = 1 : i64, tpu.core_type = #tpu.core_type<tc>, window_params = [{transform_indices = @transform_0, window_bounds = array<i64: 8, 2048>}, {transform_indices = @transform_1, window_bounds = array<i64: 2048, 128>}, {pipeline_mode = #tpu.pipeline_mode<synchronous>, transform_indices = @transform_2, window_bounds = array<i64: 1, 128>}, {pipeline_mode = #tpu.pipeline_mode<synchronous>, transform_indices = @transform_3, window_bounds = array<i64: 128, 2>}, {pipeline_mode = #tpu.pipeline_mode<synchronous>, transform_indices = @transform_4, window_bounds = array<i64: 1, 2>}, {transform_indices = @transform_5, window_bounds = array<i64: 8, 2>}]} {
    %c0_i32 = arith.constant 0 : i32
    %0 = arith.cmpi eq, %arg1, %c0_i32 : i32
    %1 = arith.extui %0 : i1 to i32
    %c0_i32_0 = arith.constant 0 : i32
    %2 = arith.cmpi ne, %1, %c0_i32_0 : i32
    scf.if %2 {
      %cst_10 = arith.constant 0.000000e+00 : f32
      %13 = vector.broadcast %cst_10 : f32 to vector<8x128xf32>
      %c0_11 = arith.constant 0 : index
      %c0_12 = arith.constant 0 : index
      %14 = vector.load %arg8[%c0_11, %c0_12] : memref<8x128xf32, #tpu.memory_space<vmem>>, vector<8x128xf32>
      tpu.vector_store %arg8[%c0_11, %c0_12], %13 {strides = array<i32>} : memref<8x128xf32, #tpu.memory_space<vmem>>, vector<8x128xf32>,
    } else {
    }
    %c0 = arith.constant 0 : index
    %c0_1 = arith.constant 0 : index
    %3 = vector.load %arg8[%c0, %c0_1] : memref<8x128xf32, #tpu.memory_space<vmem>>, vector<8x128xf32>
    %c0_2 = arith.constant 0 : index
    %c0_3 = arith.constant 0 : index
    %4 = vector.load %arg2[%c0_2, %c0_3] : memref<8x2048xf32, #tpu.memory_space<vmem>>, vector<8x2048xf32>
    %5 = arith.truncf %4 : vector<8x2048xf32> to vector<8x2048xbf16>
    %c0_4 = arith.constant 0 : index
    %c0_5 = arith.constant 0 : index
    %6 = vector.load %arg3[%c0_4, %c0_5] : memref<2048x128xbf16, #tpu.memory_space<vmem>>, vector<2048x128xbf16>
    %cst = arith.constant dense<0.000000e+00> : vector<8x128xf32>
    %7 = tpu.matmul %5, %6, %cst {dimension_numbers = #tpu.dot_dimension_numbers<[1], [0], [0], [1], [0, 0, 1, 1], [], []>} : vector<8x2048xbf16>, vector<2048x128xbf16>, vector<8x128xf32> -> vector<8x128xf32>
    %8 = arith.addf %3, %7 : vector<8x128xf32>
    %c0_6 = arith.constant 0 : index
    %c0_7 = arith.constant 0 : index
    %9 = vector.load %arg8[%c0_6, %c0_7] : memref<8x128xf32, #tpu.memory_space<vmem>>, vector<8x128xf32>
    tpu.vector_store %arg8[%c0_6, %c0_7], %8 {strides = array<i32>} : memref<8x128xf32, #tpu.memory_space<vmem>>, vector<8x128xf32>,
    %c0_i32_8 = arith.constant 0 : i32
    %10 = arith.cmpi eq, %arg1, %c0_i32_8 : i32
    %11 = arith.extui %10 : i1 to i32
    %c0_i32_9 = arith.constant 0 : i32
    %12 = arith.cmpi ne, %11, %c0_i32_9 : i32
    scf.if %12 {
      %c0_10 = arith.constant 0 : index
      %c0_11 = arith.constant 0 : index
      %13 = vector.load %arg8[%c0_10, %c0_11] : memref<8x128xf32, #tpu.memory_space<vmem>>, vector<8x128xf32>
      %c0_12 = arith.constant 0 : index
      %c0_13 = arith.constant 0 : index
      %14 = vector.load %arg4[%c0_12, %c0_13] : memref<1x128xf32, #tpu.memory_space<vmem>>, vector<1x128xf32>
      %15 = vector.broadcast %14 : vector<1x128xf32> to vector<8x128xf32>
      %16 = arith.addf %13, %15 : vector<8x128xf32>
      %cst_14 = arith.constant 0.000000e+00 : f32
      %17 = vector.broadcast %cst_14 : f32 to vector<8x128xf32>
      %18 = arith.maximumf %16, %17 : vector<8x128xf32>
      %c0_15 = arith.constant 0 : index
      %c0_16 = arith.constant 0 : index
      %19 = vector.load %arg5[%c0_15, %c0_16] : memref<128x2xf32, #tpu.memory_space<vmem>>, vector<128x2xf32>
      %cst_17 = arith.constant dense<0.000000e+00> : vector<8x2xf32>
      %20 = tpu.matmul %18, %19, %cst_17 {dimension_numbers = #tpu.dot_dimension_numbers<[1], [0], [0], [1], [0, 0, 1, 1], [], []>} : vector<8x128xf32>, vector<128x2xf32>, vector<8x2xf32> -> vector<8x2xf32>
      %c0_18 = arith.constant 0 : index
      %c0_19 = arith.constant 0 : index
      %21 = vector.load %arg6[%c0_18, %c0_19] : memref<1x2xf32, #tpu.memory_space<vmem>>, vector<1x2xf32>
      %22 = vector.broadcast %21 : vector<1x2xf32> to vector<8x2xf32>
      %23 = arith.addf %20, %22 : vector<8x2xf32>
      %cst_20 = arith.constant dense<0xFF800000> : vector<8xf32>
      %24 = vector.multi_reduction <maximumf>, %23, %cst_20 [1] : vector<8x2xf32> to vector<8xf32>
      %25 = vector.shape_cast %24 : vector<8xf32> to vector<8x1xf32>
      %26 = vector.broadcast %25 : vector<8x1xf32> to vector<8x2xf32>
      %27 = arith.subf %23, %26 : vector<8x2xf32>
      %28 = math.exp %27 : vector<8x2xf32>
      %cst_21 = arith.constant dense<0.000000e+00> : vector<8xf32>
      %29 = vector.multi_reduction <add>, %28, %cst_21 [1] : vector<8x2xf32> to vector<8xf32>
      %30 = vector.shape_cast %29 : vector<8xf32> to vector<8x1xf32>
      %31 = math.log %30 : vector<8x1xf32>
      %32 = arith.addf %25, %31 : vector<8x1xf32>
      %33 = vector.broadcast %32 : vector<8x1xf32> to vector<8x2xf32>
      %34 = arith.subf %23, %33 : vector<8x2xf32>
      %c0_22 = arith.constant 0 : index
      %c0_23 = arith.constant 0 : index
      %35 = vector.load %arg7[%c0_22, %c0_23] : memref<8x2xf32, #tpu.memory_space<vmem>>, vector<8x2xf32>
      tpu.vector_store %arg7[%c0_22, %c0_23], %34 {strides = array<i32>} : memref<8x2xf32, #tpu.memory_space<vmem>>, vector<8x2xf32>,
    } else {
    }
    return
  }
  func.func @transform_0(%arg0: i32, %arg1: i32) -> (i32, i32) {
    %c0_i32 = arith.constant 0 : i32
    return %arg0, %arg1 : i32, i32
  }
  func.func @transform_1(%arg0: i32, %arg1: i32) -> (i32, i32) {
    %c0_i32 = arith.constant 0 : i32
    %c0_i32_0 = arith.constant 0 : i32
    return %arg1, %c0_i32 : i32, i32
  }
  func.func @transform_2(%arg0: i32, %arg1: i32) -> (i32, i32) {
    %c0_i32 = arith.constant 0 : i32
    %c0_i32_0 = arith.constant 0 : i32
    %c0_i32_1 = arith.constant 0 : i32
    return %c0_i32, %c0_i32_0 : i32, i32
  }
  func.func @transform_3(%arg0: i32, %arg1: i32) -> (i32, i32) {
    %c0_i32 = arith.constant 0 : i32
    %c0_i32_0 = arith.constant 0 : i32
    %c0_i32_1 = arith.constant 0 : i32
    return %c0_i32, %c0_i32_0 : i32, i32
  }
  func.func @transform_4(%arg0: i32, %arg1: i32) -> (i32, i32) {
    %c0_i32 = arith.constant 0 : i32
    %c0_i32_0 = arith.constant 0 : i32
    %c0_i32_1 = arith.constant 0 : i32
    return %c0_i32, %c0_i32_0 : i32, i32
  }
  func.func @transform_5(%arg0: i32, %arg1: i32) -> (i32, i32) {
    %c0_i32 = arith.constant 0 : i32
    %c0_i32_0 = arith.constant 0 : i32
    return %arg0, %c0_i32 : i32, i32
  }
}

</mosaic_0001>

<bundles_post_ra>
// kernel: discriminator_forward.1
= control target key start
LH: loop header
LB: loop body
LE: loop exit
PB: predicated region body
PF: predicated region fallthrough
CT: control target
= control target key end

     0   :  { %10 = vsyncpa [#allocation4], 0  ;;  %s2053_s21 = smov [#allocation3]   ;;  %s2054_s23 = smov 64   ;;  %s2197_s0 = inlined_call_operand.vmem [shape: f32[8,2048], index: 0, kind: input, shape index: {}]   ;;  %s2198_s1 = inlined_call_operand.hbm [shape: bf16[2048,128], index: 1, kind: input, shape index: {}]   ;;  %s2199_s2 = inlined_call_operand.vmem [shape: f32[1,128], index: 2, kind: input, shape index: {}]   ;;  %s2200_s3 = inlined_call_operand.vmem [shape: f32[128,2], index: 3, kind: input, shape index: {}]   ;;  %s2201_s4 = inlined_call_operand.vmem [shape: f32[1,2], index: 4, kind: input, shape index: {}]   ;;  %s2202_s5 = inlined_call_operand.vmem [shape: f32[8,2], index: 5, kind: output, shape index: {}]  }
   0x1   :  { %s17_s20 = sshll.u32 %s2198_s1, 4  ;;  %s19_s22 = sshll.u32 %s2053_s21, 4  ;;  %s18_s20 = int_to_ptr.hbm [resolvable:$true] %s17_s20  ;;  %s20_s22 = int_to_ptr.vmem [resolvable:$true] %s19_s22 }
   0x2   :  { %s2055_s24 = smov 4  }
   0x3   :  { %25 = dma.hbm_to_vmem [thread:$0]  %s18_s20, 16384, %s20_s22, [#allocation4], %s2054_s23, %s2054_s23, %s2055_s24  }
   0x4   :  { %2051 = dma.done.wait [#allocation4], 16384  }
   0x5   :  { %2052 = vsyncadd [#allocation4], 4294950912  ;;  %v1897_v0 = vld [vmem:[#allocation3 + $0x38] sm:$0xff]  ;;  %v1896_v4 = vld [vmem:[#allocation3 + $0x30] sm:$0xff]  ;;  %vm1358_vm0 = vcmask 15360  }
   0x6   :  { %v1905_v1 = vld [vmem:[#allocation3 + $0x78] sm:$0xff]  ;;  %1098 = vmatpush.bf16.msra.mxu0 %v1897_v0  ;;  %v1904_v5 = vld [vmem:[#allocation3 + $0x70] sm:$0xff]  ;;  %v1895_v8 = vld [vmem:[#allocation3 + $0x28] sm:$0xff] }
   0x7   :  { %v1913_v2 = vld [vmem:[#allocation3 + $0xb8] sm:$0xff]  ;;  %1111 = vmatpush.bf16.msra.mxu1 %v1905_v1  ;;  %v1912_v6 = vld [vmem:[#allocation3 + $0xb0] sm:$0xff]  ;;  %v1903_v9 = vld [vmem:[#allocation3 + $0x68] sm:$0xff] }
   0x8   :  { %v1921_v3 = vld [vmem:[#allocation3 + $0xf8] sm:$0xff]  ;;  %1124 = vmatpush.bf16.msra.mxu2 %v1913_v2  ;;  %v1920_v7 = vld [vmem:[#allocation3 + $0xf0] sm:$0xff]  ;;  %v1911_v10 = vld [vmem:[#allocation3 + $0xa8] sm:$0xff] }
   0x9   :  { %1137 = vmatpush.bf16.msra.mxu3 %v1921_v3  ;;  %v1919_v11 = vld [vmem:[#allocation3 + $0xe8] sm:$0xff]  ;;  %v1894_v12 = vld [vmem:[#allocation3 + $0x20] sm:$0xff]  ;;  %v1893_v16 = vld [vmem:[#allocation3 + $0x18] sm:$0xff] }
   0xa   :  { %1099 = vmatpush.bf16.msra.mxu0 %v1896_v4  ;;  %v1902_v13 = vld [vmem:[#allocation3 + $0x60] sm:$0xff]  ;;  %v1901_v17 = vld [vmem:[#allocation3 + $0x58] sm:$0xff]  ;;  %v1892_v20 = vld [vmem:[#allocation3 + $0x10] sm:$0xff] }
   0xb   :  { %1112 = vmatpush.bf16.msra.mxu1 %v1904_v5  ;;  %v1910_v14 = vld [vmem:[#allocation3 + $0xa0] sm:$0xff]  ;;  %v1909_v18 = vld [vmem:[#allocation3 + $0x98] sm:$0xff]  ;;  %v1900_v21 = vld [vmem:[#allocation3 + $0x50] sm:$0xff] }
   0xc   :  { %1125 = vmatpush.bf16.msra.mxu2 %v1912_v6  ;;  %v1918_v15 = vld [vmem:[#allocation3 + $0xe0] sm:$0xff]  ;;  %v1917_v19 = vld [vmem:[#allocation3 + $0xd8] sm:$0xff]  ;;  %v1908_v22 = vld [vmem:[#allocation3 + $0x90] sm:$0xff] }
   0xd   :  { %1138 = vmatpush.bf16.msra.mxu3 %v1920_v7  ;;  %v1916_v23 = vld [vmem:[#allocation3 + $0xd0] sm:$0xff]  ;;  %v1891_v24 = vld [vmem:[#allocation3 + $0x8] sm:$0xff]  ;;  %v1890_v28 = vld [vmem:[#allocation3] sm:$0xff] }
   0xe   :  { %1100 = vmatpush.bf16.msra.mxu0 %v1895_v8  ;;  %v1899_v25 = vld [vmem:[#allocation3 + $0x48] sm:$0xff]  ;;  %v1898_v29 = vld [vmem:[#allocation3 + $0x40] sm:$0xff]  ;;  %v1929_v32 = vld [vmem:[#allocation3 + $0x138] sm:$0xff] }
   0xf   :  { %1113 = vmatpush.bf16.msra.mxu1 %v1903_v9  ;;  %v1907_v26 = vld [vmem:[#allocation3 + $0x88] sm:$0xff]  ;;  %v1906_v30 = vld [vmem:[#allocation3 + $0x80] sm:$0xff]  ;;  %v44_v33 = vld [vmem:[%s2197_s0 + $0x10] sm:$0xff] }
  0x10   :  { %1126 = vmatpush.bf16.msra.mxu2 %v1911_v10  ;;  %v1915_v27 = vld [vmem:[#allocation3 + $0xc8] sm:$0xff]  ;;  %v1914_v31 = vld [vmem:[#allocation3 + $0xc0] sm:$0xff]  ;;  %v1937_v35 = vld [vmem:[#allocation3 + $0x178] sm:$0xff]  ;;  %v60_v40 = vpack.c.bf16 %v44_v33, %v44_v33 }
  0x11   :  { %1139 = vmatpush.bf16.msra.mxu3 %v1919_v11  ;;  %v42_v34 = vld [vmem:[%s2197_s0] sm:$0xff]  ;;  %v45_v36 = vld [vmem:[%s2197_s0 + $0x18] sm:$0xff]  ;;  %v43_v37 = vld [vmem:[%s2197_s0 + $0x8] sm:$0xff] }
  0x12   :  { %1101 = vmatpush.bf16.msra.mxu0 %v1894_v12  ;;  %v1945_v38 = vld [vmem:[#allocation3 + $0x1b8] sm:$0xff]  ;;  %v58_v41 = vpack.c.bf16 %v42_v34, %v42_v34  ;;  %v61_v42 = vpack.c.bf16 %v45_v36, %v45_v36  ;;  %v59_v43 = vpack.c.bf16 %v43_v37, %v43_v37  ;;  %v1928_v44 = vld [vmem:[#allocation3 + $0x130] sm:$0xff]  ;;  %v1927_v48 = vld [vmem:[#allocation3 + $0x128] sm:$0xff] }
  0x13   :  { %1114 = vmatpush.bf16.msra.mxu1 %v1902_v13  ;;  %v1953_v39 = vld [vmem:[#allocation3 + $0x1f8] sm:$0xff]  ;;  %v1936_v45 = vld [vmem:[#allocation3 + $0x170] sm:$0xff]  ;;  %v1935_v49 = vld [vmem:[#allocation3 + $0x168] sm:$0xff] }
  0x14   :  { %1127 = vmatpush.bf16.msra.mxu2 %v1910_v14  ;;  %v1944_v46 = vld [vmem:[#allocation3 + $0x1b0] sm:$0xff]  ;;  %v1943_v50 = vld [vmem:[#allocation3 + $0x1a8] sm:$0xff]  ;;  %v1926_v52 = vld [vmem:[#allocation3 + $0x120] sm:$0xff] }
  0x15   :  { %1140 = vmatpush.bf16.msra.mxu3 %v1918_v15  ;;  %v1952_v47 = vld [vmem:[#allocation3 + $0x1f0] sm:$0xff]  ;;  %v1951_v51 = vld [vmem:[#allocation3 + $0x1e8] sm:$0xff]  ;;  %v1934_v53 = vld [vmem:[#allocation3 + $0x160] sm:$0xff] }
  0x16   :  { %1102 = vmatpush.bf16.msra.mxu0 %v1893_v16  ;;  %v1942_v54 = vld [vmem:[#allocation3 + $0x1a0] sm:$0xff]  ;;  %v1925_v56 = vld [vmem:[#allocation3 + $0x118] sm:$0xff]  ;;  %v1924_v60 = vld [vmem:[#allocation3 + $0x110] sm:$0xff] }
  0x17   :  { %1115 = vmatpush.bf16.msra.mxu1 %v1901_v17  ;;  %v1950_v55 = vld [vmem:[#allocation3 + $0x1e0] sm:$0xff]  ;;  %v1933_v57 = vld [vmem:[#allocation3 + $0x158] sm:$0xff]  ;;  %v1932_v61 = vld [vmem:[#allocation3 + $0x150] sm:$0xff] }
  0x18   :  { %1128 = vmatpush.bf16.msra.mxu2 %v1909_v18  ;;  %v1941_v58 = vld [vmem:[#allocation3 + $0x198] sm:$0xff]  ;;  %v1940_v62 = vld [vmem:[#allocation3 + $0x190] sm:$0xff]  ;;  %v1923_v0 = vld [vmem:[#allocation3 + $0x108] sm:$0xff] }
  0x19   :  { %1141 = vmatpush.bf16.msra.mxu3 %v1917_v19  ;;  %v1949_v59 = vld [vmem:[#allocation3 + $0x1d8] sm:$0xff]  ;;  %v1948_v63 = vld [vmem:[#allocation3 + $0x1d0] sm:$0xff]  ;;  %v1931_v1 = vld [vmem:[#allocation3 + $0x148] sm:$0xff] }
  0x1a   :  { %1103 = vmatpush.bf16.msra.mxu0 %v1892_v20  ;;  %v1939_v2 = vld [vmem:[#allocation3 + $0x188] sm:$0xff]  ;;  %v1922_v4 = vld [vmem:[#allocation3 + $0x100] sm:$0xff]  ;;  %v1961_v8 = vld [vmem:[#allocation3 + $0x238] sm:$0xff] }
  0x1b   :  { %1116 = vmatpush.bf16.msra.mxu1 %v1900_v21  ;;  %v1947_v3 = vld [vmem:[#allocation3 + $0x1c8] sm:$0xff]  ;;  %v1930_v5 = vld [vmem:[#allocation3 + $0x140] sm:$0xff]  ;;  %v48_v9 = vld [vmem:[%s2197_s0 + $0x30] sm:$0xff] }
  0x1c   :  { %1129 = vmatpush.bf16.msra.mxu2 %v1908_v22  ;;  %v1938_v6 = vld [vmem:[#allocation3 + $0x180] sm:$0xff]  ;;  %v1969_v11 = vld [vmem:[#allocation3 + $0x278] sm:$0xff]  ;;  %v47_v13 = vld [vmem:[%s2197_s0 + $0x28] sm:$0xff]  ;;  %v64_v16 = vpack.c.bf16 %v48_v9, %v48_v9 }
  0x1d   :  { %1142 = vmatpush.bf16.msra.mxu3 %v1916_v23  ;;  %v1946_v7 = vld [vmem:[#allocation3 + $0x1c0] sm:$0xff]  ;;  %v49_v12 = vld [vmem:[%s2197_s0 + $0x38] sm:$0xff]  ;;  %v63_v19 = vpack.c.bf16 %v47_v13, %v47_v13  ;;  %v1960_v20 = vld [vmem:[#allocation3 + $0x230] sm:$0xff] }
  0x1e   :  { %1104 = vmatpush.bf16.msra.mxu0 %v1891_v24  ;;  %v46_v10 = vld [vmem:[%s2197_s0 + $0x20] sm:$0xff]  ;;  %v1977_v14 = vld [vmem:[#allocation3 + $0x2b8] sm:$0xff]  ;;  %v65_v18 = vpack.c.bf16 %v49_v12, %v49_v12  ;;  %v1968_v21 = vld [vmem:[#allocation3 + $0x270] sm:$0xff] }
  0x1f   :  { %1117 = vmatpush.bf16.msra.mxu1 %v1899_v25  ;;  %v1985_v15 = vld [vmem:[#allocation3 + $0x2f8] sm:$0xff]  ;;  %v62_v17 = vpack.c.bf16 %v46_v10, %v46_v10  ;;  %v1976_v22 = vld [vmem:[#allocation3 + $0x2b0] sm:$0xff]  ;;  %v1959_v24 = vld [vmem:[#allocation3 + $0x228] sm:$0xff] }
  0x20   :  { %1130 = vmatpush.bf16.msra.mxu2 %v1907_v26  ;;  %v1984_v23 = vld [vmem:[#allocation3 + $0x2f0] sm:$0xff]  ;;  %v1967_v25 = vld [vmem:[#allocation3 + $0x268] sm:$0xff]  ;;  %v1965_v33 = vld [vmem:[#allocation3 + $0x258] sm:$0xff] }
  0x21   :  { %1143 = vmatpush.bf16.msra.mxu3 %v1915_v27  ;;  %v1975_v26 = vld [vmem:[#allocation3 + $0x2a8] sm:$0xff]  ;;  %v1973_v34 = vld [vmem:[#allocation3 + $0x298] sm:$0xff]  ;;  %v1956_v36 = vld [vmem:[#allocation3 + $0x210] sm:$0xff] }
  0x22   :  { %1105 = vmatpush.bf16.msra.mxu0 %v1890_v28  ;;  %v1983_v27 = vld [vmem:[#allocation3 + $0x2e8] sm:$0xff]  ;;  %v1958_v28 = vld [vmem:[#allocation3 + $0x220] sm:$0xff]  ;;  %v1964_v37 = vld [vmem:[#allocation3 + $0x250] sm:$0xff] }
  0x23   :  { %1118 = vmatpush.bf16.msra.mxu1 %v1898_v29  ;;  %v1966_v29 = vld [vmem:[#allocation3 + $0x260] sm:$0xff]  ;;  %v1997_v9 = vld [vmem:[#allocation3 + $0x358] sm:$0xff]  ;;  %v1988_v12 = vld [vmem:[#allocation3 + $0x310] sm:$0xff] }
  0x24   :  { %1131 = vmatpush.bf16.msra.mxu2 %v1906_v30  ;;  %v1974_v30 = vld [vmem:[#allocation3 + $0x2a0] sm:$0xff]  ;;  %v2005_v10 = vld [vmem:[#allocation3 + $0x398] sm:$0xff]  ;;  %v1996_v13 = vld [vmem:[#allocation3 + $0x350] sm:$0xff] }
  0x25   :  { %1144 = vmatpush.bf16.msra.mxu3 %v1914_v31  ;;  %1106 = vmatmul.bf16.vlgmr.msra.gmra.mxu0 %v58_v41  ;;  %v1982_v31 = vld [vmem:[#allocation3 + $0x2e0] sm:$0xff]  ;;  %v1963_v41 = vld [vmem:[#allocation3 + $0x248] sm:$0xff] }
  0x26   :  { %1150 = vmatpush.bf16.msrb.mxu0 %v1929_v32  ;;  %1119 = vmatmul.bf16.vlgmr.msra.gmra.mxu1 %v59_v43  ;;  %v1957_v32 = vld [vmem:[#allocation3 + $0x218] sm:$0xff]  ;;  %v1979_v43 = vld [vmem:[#allocation3 + $0x2c8] sm:$0xff] }
  0x27   :  { %1163 = vmatpush.bf16.msrb.mxu1 %v1937_v35  ;;  %1132 = vmatmul.bf16.vlgmr.msra.gmra.mxu2 %v60_v40  ;;  %v1981_v35 = vld [vmem:[#allocation3 + $0x2d8] sm:$0xff]  ;;  %v1955_v40 = vld [vmem:[#allocation3 + $0x208] sm:$0xff] }
  0x28   :  { %1176 = vmatpush.bf16.msrb.mxu2 %v1945_v38  ;;  %1145 = vmatmul.bf16.vlgmr.msra.gmra.mxu3 %v61_v42  ;;  %v1972_v38 = vld [vmem:[#allocation3 + $0x290] sm:$0xff]  ;;  %v1971_v42 = vld [vmem:[#allocation3 + $0x288] sm:$0xff] }
  0x29   :  { %1189 = vmatpush.bf16.msrb.mxu3 %v1953_v39  ;;  %v1980_v39 = vld [vmem:[#allocation3 + $0x2d0] sm:$0xff] }
  0x2a   :  { %1151 = vmatpush.bf16.msrb.mxu0 %v1928_v44  ;;  %v1954_v44 = vld [vmem:[#allocation3 + $0x200] sm:$0xff] }
  0x2b   :  { %1164 = vmatpush.bf16.msrb.mxu1 %v1936_v45  ;;  %v1962_v45 = vld [vmem:[#allocation3 + $0x240] sm:$0xff] }
  0x2c   :  { %1177 = vmatpush.bf16.msrb.mxu2 %v1944_v46  ;;  %v1970_v46 = vld [vmem:[#allocation3 + $0x280] sm:$0xff] }
  0x2d   :  { %1190 = vmatpush.bf16.msrb.mxu3 %v1952_v47  ;;  %v1978_v47 = vld [vmem:[#allocation3 + $0x2c0] sm:$0xff] }
  0x2e   :  { %1152 = vmatpush.bf16.msrb.mxu0 %v1927_v48  ;;  %v1993_v48 = vld [vmem:[#allocation3 + $0x338] sm:$0xff] }
  0x2f   :  { %1165 = vmatpush.bf16.msrb.mxu1 %v1935_v49  ;;  %v50_v49 = vld [vmem:[%s2197_s0 + $0x40] sm:$0xff] }
  0x30   :  { %1178 = vmatpush.bf16.msrb.mxu2 %v1943_v50  ;;  %v52_v50 = vld [vmem:[%s2197_s0 + $0x50] sm:$0xff] }
  0x31   :  { %1191 = vmatpush.bf16.msrb.mxu3 %v1951_v51  ;;  %v2001_v51 = vld [vmem:[#allocation3 + $0x378] sm:$0xff] }
  0x32   :  { %1153 = vmatpush.bf16.msrb.mxu0 %v1926_v52  ;;  %v51_v52 = vld [vmem:[%s2197_s0 + $0x48] sm:$0xff] }
  0x33   :  { %1166 = vmatpush.bf16.msrb.mxu1 %v1934_v53  ;;  %v53_v53 = vld [vmem:[%s2197_s0 + $0x58] sm:$0xff] }
  0x34   :  { %1179 = vmatpush.bf16.msrb.mxu2 %v1942_v54  ;;  %v2009_v54 = vld [vmem:[#allocation3 + $0x3b8] sm:$0xff] }
  0x35   :  { %1192 = vmatpush.bf16.msrb.mxu3 %v1950_v55  ;;  %v2017_v55 = vld [vmem:[#allocation3 + $0x3f8] sm:$0xff] }
  0x36   :  { %1154 = vmatpush.bf16.msrb.mxu0 %v1925_v56  ;;  %v66_v56 = vpack.c.bf16 %v50_v49, %v50_v49 }
  0x37   :  { %1167 = vmatpush.bf16.msrb.mxu1 %v1933_v57  ;;  %v68_v57 = vpack.c.bf16 %v52_v50, %v52_v50 }
  0x38   :  { %1180 = vmatpush.bf16.msrb.mxu2 %v1941_v58  ;;  %v67_v58 = vpack.c.bf16 %v51_v52, %v51_v52  ;;  %v1330_v52 = vld [vmem:[%s2200_s3 + $0x60] sm:$0xff] }
  0x39   :  { %1193 = vmatpush.bf16.msrb.mxu3 %v1949_v59  ;;  %v69_v59 = vpack.c.bf16 %v53_v53, %v53_v53  ;;  %v1329_v53 = vld [vmem:[%s2200_s3 + $0x58] sm:$0xff] }
  0x3a   :  { %1155 = vmatpush.bf16.msrb.mxu0 %v1924_v60  ;;  %v1992_v60 = vld [vmem:[#allocation3 + $0x330] sm:$0xff] }
  0x3b   :  { %1168 = vmatpush.bf16.msrb.mxu1 %v1932_v61  ;;  %v2000_v61 = vld [vmem:[#allocation3 + $0x370] sm:$0xff] }
  0x3c   :  { %1181 = vmatpush.bf16.msrb.mxu2 %v1940_v62  ;;  %v2008_v62 = vld [vmem:[#allocation3 + $0x3b0] sm:$0xff] }
  0x3d   :  { %1194 = vmatpush.bf16.msrb.mxu3 %v1948_v63  ;;  %v2016_v63 = vld [vmem:[#allocation3 + $0x3f0] sm:$0xff] }
  0x3e   :  { %1156 = vmatpush.bf16.msrb.mxu0 %v1923_v0  ;;  %v1991_v0 = vld [vmem:[#allocation3 + $0x328] sm:$0xff] }
  0x3f   :  { %1169 = vmatpush.bf16.msrb.mxu1 %v1931_v1  ;;  %v1999_v1 = vld [vmem:[#allocation3 + $0x368] sm:$0xff] }
  0x40   :  { %1182 = vmatpush.bf16.msrb.mxu2 %v1939_v2  ;;  %v2007_v2 = vld [vmem:[#allocation3 + $0x3a8] sm:$0xff] }
  0x41   :  { %1195 = vmatpush.bf16.msrb.mxu3 %v1947_v3  ;;  %v2015_v3 = vld [vmem:[#allocation3 + $0x3e8] sm:$0xff] }
  0x42   :  { %1157 = vmatpush.bf16.msrb.mxu0 %v1922_v4  ;;  %v1990_v4 = vld [vmem:[#allocation3 + $0x320] sm:$0xff] }
  0x43   :  { %1170 = vmatpush.bf16.msrb.mxu1 %v1930_v5  ;;  %v1998_v5 = vld [vmem:[#allocation3 + $0x360] sm:$0xff] }
  0x44   :  { %1183 = vmatpush.bf16.msrb.mxu2 %v1938_v6  ;;  %v2006_v6 = vld [vmem:[#allocation3 + $0x3a0] sm:$0xff] }
  0x45   :  { %1196 = vmatpush.bf16.msrb.mxu3 %v1946_v7  ;;  %1158 = vmatmul.bf16.vlgmr.msrb.gmra.mxu0 %v62_v17  ;;  %v2014_v7 = vld [vmem:[#allocation3 + $0x3e0] sm:$0xff]  ;;  %v1995_v17 = vld [vmem:[#allocation3 + $0x348] sm:$0xff] }
  0x46   :  { %1202 = vmatpush.bf16.msra.mxu0 %v1961_v8  ;;  %1171 = vmatmul.bf16.vlgmr.msrb.gmra.mxu1 %v63_v19  ;;  %v1989_v8 = vld [vmem:[#allocation3 + $0x318] sm:$0xff]  ;;  %v2011_v19 = vld [vmem:[#allocation3 + $0x3c8] sm:$0xff] }
  0x47   :  { %1215 = vmatpush.bf16.msra.mxu1 %v1969_v11  ;;  %1184 = vmatmul.bf16.vlgmr.msrb.gmra.mxu2 %v64_v16  ;;  %v2013_v11 = vld [vmem:[#allocation3 + $0x3d8] sm:$0xff]  ;;  %v1987_v16 = vld [vmem:[#allocation3 + $0x308] sm:$0xff] }
  0x48   :  { %1228 = vmatpush.bf16.msra.mxu2 %v1977_v14  ;;  %1197 = vmatmul.bf16.vlgmr.msrb.gmra.mxu3 %v65_v18  ;;  %v2004_v14 = vld [vmem:[#allocation3 + $0x390] sm:$0xff]  ;;  %v2003_v18 = vld [vmem:[#allocation3 + $0x388] sm:$0xff] }
  0x49   :  { %1241 = vmatpush.bf16.msra.mxu3 %v1985_v15  ;;  %v2012_v15 = vld [vmem:[#allocation3 + $0x3d0] sm:$0xff] }
  0x4a   :  { %1203 = vmatpush.bf16.msra.mxu0 %v1960_v20  ;;  %v1986_v20 = vld [vmem:[#allocation3 + $0x300] sm:$0xff] }
  0x4b   :  { %1216 = vmatpush.bf16.msra.mxu1 %v1968_v21  ;;  %v1994_v21 = vld [vmem:[#allocation3 + $0x340] sm:$0xff] }
  0x4c   :  { %1229 = vmatpush.bf16.msra.mxu2 %v1976_v22  ;;  %v2002_v22 = vld [vmem:[#allocation3 + $0x380] sm:$0xff] }
  0x4d   :  { %1242 = vmatpush.bf16.msra.mxu3 %v1984_v23  ;;  %v54_v23 = vld [vmem:[%s2197_s0 + $0x60] sm:$0xff] }
  0x4e   :  { %1204 = vmatpush.bf16.msra.mxu0 %v1959_v24  ;;  %v55_v24 = vld [vmem:[%s2197_s0 + $0x68] sm:$0xff] }
  0x4f   :  { %1217 = vmatpush.bf16.msra.mxu1 %v1967_v25  ;;  %v2010_v25 = vld [vmem:[#allocation3 + $0x3c0] sm:$0xff] }
  0x50   :  { %1230 = vmatpush.bf16.msra.mxu2 %v1975_v26  ;;  %v56_v26 = vld [vmem:[%s2197_s0 + $0x70] sm:$0xff] }
  0x51   :  { %1243 = vmatpush.bf16.msra.mxu3 %v1983_v27  ;;  %v57_v27 = vld [vmem:[%s2197_s0 + $0x78] sm:$0xff] }
  0x52   :  { %1205 = vmatpush.bf16.msra.mxu0 %v1958_v28  ;;  %v70_v28 = vpack.c.bf16 %v54_v23, %v54_v23 }
  0x53   :  { %1218 = vmatpush.bf16.msra.mxu1 %v1966_v29  ;;  %v71_v29 = vpack.c.bf16 %v55_v24, %v55_v24 }
  0x54   :  { %1231 = vmatpush.bf16.msra.mxu2 %v1974_v30  ;;  %v72_v30 = vpack.c.bf16 %v56_v26, %v56_v26  ;;  %v2021_v26 = vld [vmem:[%s2199_s2] ss:$0 sm:$0xff] }
  0x55   :  { %1244 = vmatpush.bf16.msra.mxu3 %v1982_v31  ;;  %v73_v31 = vpack.c.bf16 %v57_v27, %v57_v27 }
  0x56   :  { %1206 = vmatpush.bf16.msra.mxu0 %v1957_v32 }
  0x57   :  { %1219 = vmatpush.bf16.msra.mxu1 %v1965_v33 }
  0x58   :  { %1232 = vmatpush.bf16.msra.mxu2 %v1973_v34 }
  0x59   :  { %1245 = vmatpush.bf16.msra.mxu3 %v1981_v35 }
  0x5a   :  { %1207 = vmatpush.bf16.msra.mxu0 %v1956_v36 }
  0x5b   :  { %1220 = vmatpush.bf16.msra.mxu1 %v1964_v37 }
  0x5c   :  { %1233 = vmatpush.bf16.msra.mxu2 %v1972_v38 }
  0x5d   :  { %1246 = vmatpush.bf16.msra.mxu3 %v1980_v39 }
  0x5e   :  { %1208 = vmatpush.bf16.msra.mxu0 %v1955_v40 }
  0x5f   :  { %1221 = vmatpush.bf16.msra.mxu1 %v1963_v41 }
  0x60   :  { %1234 = vmatpush.bf16.msra.mxu2 %v1971_v42 }
  0x61   :  { %1247 = vmatpush.bf16.msra.mxu3 %v1979_v43 }
  0x62   :  { %1209 = vmatpush.bf16.msra.mxu0 %v1954_v44 }
  0x63   :  { %1222 = vmatpush.bf16.msra.mxu1 %v1962_v45 }
  0x64   :  { %1235 = vmatpush.bf16.msra.mxu2 %v1970_v46 }
  0x65   :  { %1248 = vmatpush.bf16.msra.mxu3 %v1978_v47  ;;  %1210 = vmatmul.bf16.vlgmr.msra.gmra.mxu0 %v66_v56  ;;  %v1333_v47 = vld [vmem:[%s2200_s3 + $0x78] sm:$0xff]  ;;  %v1328_v56 = vld [vmem:[%s2200_s3 + $0x50] sm:$0xff] }
  0x66   :  { %1254 = vmatpush.bf16.msrb.mxu0 %v1993_v48  ;;  %1223 = vmatmul.bf16.vlgmr.msra.gmra.mxu1 %v67_v58  ;;  %v1332_v48 = vld [vmem:[%s2200_s3 + $0x70] sm:$0xff]  ;;  %v1326_v58 = vld [vmem:[%s2200_s3 + $0x40] sm:$0xff] }
  0x67   :  { %1267 = vmatpush.bf16.msrb.mxu1 %v2001_v51  ;;  %1236 = vmatmul.bf16.vlgmr.msra.gmra.mxu2 %v68_v57  ;;  %v1331_v51 = vld [vmem:[%s2200_s3 + $0x68] sm:$0xff] }
  0x68   :  { %1280 = vmatpush.bf16.msrb.mxu2 %v2009_v54  ;;  %1249 = vmatmul.bf16.vlgmr.msra.gmra.mxu3 %v69_v59  ;;  %v1327_v57 = vld [vmem:[%s2200_s3 + $0x48] sm:$0xff]  ;;  %v1325_v59 = vld [vmem:[%s2200_s3 + $0x38] sm:$0xff] }
  0x69   :  { %1293 = vmatpush.bf16.msrb.mxu3 %v2017_v55 }
  0x6a   :  { %1255 = vmatpush.bf16.msrb.mxu0 %v1992_v60  ;;  %v1324_v60 = vld [vmem:[%s2200_s3 + $0x30] sm:$0xff] }
  0x6b   :  { %1268 = vmatpush.bf16.msrb.mxu1 %v2000_v61 }
  0x6c   :  { %1281 = vmatpush.bf16.msrb.mxu2 %v2008_v62  ;;  %v1323_v62 = vld [vmem:[%s2200_s3 + $0x28] sm:$0xff] }
  0x6d   :  { %1294 = vmatpush.bf16.msrb.mxu3 %v2016_v63 }
  0x6e   :  { %1256 = vmatpush.bf16.msrb.mxu0 %v1991_v0  ;;  %v1322_v0 = vld [vmem:[%s2200_s3 + $0x20] sm:$0xff] }
  0x6f   :  { %1269 = vmatpush.bf16.msrb.mxu1 %v1999_v1 }
  0x70   :  { %1282 = vmatpush.bf16.msrb.mxu2 %v2007_v2  ;;  %v1321_v2 = vld [vmem:[%s2200_s3 + $0x18] sm:$0xff] }
  0x71   :  { %1295 = vmatpush.bf16.msrb.mxu3 %v2015_v3 }
  0x72   :  { %1257 = vmatpush.bf16.msrb.mxu0 %v1990_v4 }
  0x73   :  { %1270 = vmatpush.bf16.msrb.mxu1 %v1998_v5  ;;  %v1320_v5 = vld [vmem:[%s2200_s3 + $0x10] sm:$0xff] }
  0x74   :  { %1283 = vmatpush.bf16.msrb.mxu2 %v2006_v6 }
  0x75   :  { %1296 = vmatpush.bf16.msrb.mxu3 %v2014_v7 }
  0x76   :  { %1258 = vmatpush.bf16.msrb.mxu0 %v1989_v8 }
  0x77   :  { %1271 = vmatpush.bf16.msrb.mxu1 %v1997_v9  ;;  %v1319_v9 = vld [vmem:[%s2200_s3 + $0x8] sm:$0xff] }
  0x78   :  { %1284 = vmatpush.bf16.msrb.mxu2 %v2005_v10  ;;  %v1318_v10 = vld [vmem:[%s2200_s3] sm:$0xff] }
  0x79   :  { %1297 = vmatpush.bf16.msrb.mxu3 %v2013_v11 }
  0x7a   :  { %1259 = vmatpush.bf16.msrb.mxu0 %v1988_v12 }
  0x7b   :  { %1272 = vmatpush.bf16.msrb.mxu1 %v1996_v13 }
  0x7c   :  { %1285 = vmatpush.bf16.msrb.mxu2 %v2004_v14 }
  0x7d   :  { %1298 = vmatpush.bf16.msrb.mxu3 %v2012_v15 }
  0x7e   :  { %1260 = vmatpush.bf16.msrb.mxu0 %v1987_v16 }
  0x7f   :  { %1273 = vmatpush.bf16.msrb.mxu1 %v1995_v17 }
  0x80   :  { %1286 = vmatpush.bf16.msrb.mxu2 %v2003_v18 }
  0x81   :  { %1299 = vmatpush.bf16.msrb.mxu3 %v2011_v19 }
  0x82   :  { %1261 = vmatpush.bf16.msrb.mxu0 %v1986_v20 }
  0x83   :  { %1274 = vmatpush.bf16.msrb.mxu1 %v1994_v21 }
  0x84   :  { %1287 = vmatpush.bf16.msrb.mxu2 %v2002_v22 }
  0x85   :  { %1300 = vmatpush.bf16.msrb.mxu3 %v2010_v25  ;;  %1262 = vmatmul.bf16.vlgmr.msrb.gmra.mxu0 %v70_v28 }
  0x86   :  { %1275 = vmatmul.bf16.vlgmr.msrb.gmra.mxu1 %v71_v29  ;;  %1338 = vmatpush.msra.mxu0 %v1333_v47 }
  0x87   :  { %1288 = vmatmul.bf16.vlgmr.msrb.gmra.mxu2 %v72_v30 }
  0x88   :  { %1301 = vmatmul.bf16.vlgmr.msrb.gmra.mxu3 %v73_v31  ;;  %1339 = vmatpush.msra.mxu0 %v1332_v48 }
  0x8a   :  { %1340 = vmatpush.msra.mxu0 %v1331_v51 }
  0x8c   :  { %1341 = vmatpush.msra.mxu0 %v1330_v52 }
  0x8e   :  { %1342 = vmatpush.msra.mxu0 %v1329_v53 }
  0x90   :  { %1343 = vmatpush.msra.mxu0 %v1328_v56 }
  0x92   :  { %1344 = vmatpush.msra.mxu0 %v1327_v57 }
  0x94   :  { %1345 = vmatpush.msra.mxu0 %v1326_v58 }
  0x96   :  { %1346 = vmatpush.msra.mxu0 %v1325_v59 }
  0x98   :  { %1347 = vmatpush.msra.mxu0 %v1324_v60 }
  0x9a   :  { %1348 = vmatpush.msra.mxu0 %v1323_v62 }
  0x9c   :  { %1349 = vmatpush.msra.mxu0 %v1322_v0 }
  0x9e   :  { %1350 = vmatpush.msra.mxu0 %v1321_v2 }
  0xa0   :  { %1351 = vmatpush.msra.mxu0 %v1320_v5 }
  0xa2   :  { %v1107_v32 = vpop.f32.mrf.mxu0  ;;  %1352 = vmatpush.msra.mxu0 %v1319_v9 }
  0xa3   :  { %v1120_v33 = vpop.f32.mrf.mxu1 }
  0xa4   :  { %v1121_v34 = vadd.f32 %v1120_v33, %v1107_v32  ;;  %1353 = vmatpush.msra.mxu0 %v1318_v10 }
  0xaa   :  { %v1133_v35 = vpop.f32.mrf.mxu2  ;;  %v1109_v38 = vpop.f32.mrf.mxu0 }
  0xab   :  { %v1134_v36 = vadd.f32 %v1133_v35, %v1121_v34  ;;  %v1146_v37 = vpop.f32.mrf.mxu3  ;;  %v1122_v40 = vpop.f32.mrf.mxu1  ;;  %v2022_v34 = vld [vmem:[%s2201_s4] ss:$0 sm:$0xff] }
  0xad   :  { %v1147_v39 = vadd.f32 %v1146_v37, %v1134_v36 }
  0xb2   :  { %v1135_v41 = vpop.f32.mrf.mxu2 }
  0xb3   :  { %v1148_v42 = vpop.f32.mrf.mxu3 }
  0xc2   :  { %v1159_v43 = vpop.f32.mrf.mxu0 }
  0xc3   :  { %v1172_v44 = vpop.f32.mrf.mxu1  ;;  %v1160_v1 = vadd.f32 %v1159_v43, %v1147_v39 }
  0xc5   :  { %v1173_v7 = vadd.f32 %v1172_v44, %v1160_v1 }
  0xca   :  { %v1185_v45 = vpop.f32.mrf.mxu2  ;;  %v1161_v49 = vpop.f32.mrf.mxu0 }
  0xcb   :  { %v1198_v46 = vpop.f32.mrf.mxu3  ;;  %v1174_v50 = vpop.f32.mrf.mxu1  ;;  %v1186_v11 = vadd.f32 %v1185_v45, %v1173_v7 }
  0xcd   :  { %v1199_v14 = vadd.f32 %v1198_v46, %v1186_v11 }
  0xd2   :  { %v1187_v54 = vpop.f32.mrf.mxu2 }
  0xd3   :  { %v1200_v55 = vpop.f32.mrf.mxu3 }
  0xe2   :  { %v1211_v61 = vpop.f32.mrf.mxu0 }
  0xe3   :  { %v1224_v63 = vpop.f32.mrf.mxu1  ;;  %v1212_v15 = vadd.f32 %v1211_v61, %v1199_v14 }
  0xe5   :  { %v1225_v16 = vadd.f32 %v1224_v63, %v1212_v15 }
  0xea   :  { %v1237_v3 = vpop.f32.mrf.mxu2  ;;  %v1213_v6 = vpop.f32.mrf.mxu0 }
  0xeb   :  { %v1250_v4 = vpop.f32.mrf.mxu3  ;;  %v1226_v8 = vpop.f32.mrf.mxu1  ;;  %v1238_v17 = vadd.f32 %v1237_v3, %v1225_v16 }
  0xed   :  { %v1251_v18 = vadd.f32 %v1250_v4, %v1238_v17 }
  0xf2   :  { %v1239_v12 = vpop.f32.mrf.mxu2 }
  0xf3   :  { %v1252_v13 = vpop.f32.mrf.mxu3 }
 0x102   :  { %v1263_v19 = vpop.f32.mrf.mxu0 }
 0x103   :  { %v1276_v20 = vpop.f32.mrf.mxu1  ;;  %v1264_v21 = vadd.f32 %v1263_v19, %v1251_v18 }
 0x105   :  { %v1277_v22 = vadd.f32 %v1276_v20, %v1264_v21 }
 0x10a   :  { %v1289_v23 = vpop.f32.mrf.mxu2  ;;  %v1265_v27 = vpop.f32.mrf.mxu0 }
 0x10b   :  { %v1302_v24 = vpop.f32.mrf.mxu3  ;;  %v1290_v25 = vadd.f32 %v1289_v23, %v1277_v22  ;;  %v1278_v28 = vpop.f32.mrf.mxu1 }
 0x10d   :  { %v1303_v29 = vadd.f32 %v1302_v24, %v1290_v25 }
 0x10f   :  { %v1316_v30 = vadd.f32 %v2021_v26, %v1303_v29 }
 0x111   :  { %v1317_v31 = vmax.f32 %v1316_v30, 0.0 }
 0x112   :  { %v1291_v32 = vpop.f32.mrf.mxu2 }
 0x113   :  { %v1304_v33 = vpop.f32.mrf.mxu3  ;;  %1354 = vmatmul.f32.vlgmr.msra.gmra.mxu0 %v1317_v31 }
 0x190   :  { %v1355_v35 = vpop.f32.mrf.mxu0 }
 0x191   :  { %v1356_v36 = vadd.f32 %v2022_v34, %v1355_v35 }
 0x193   :  { %v1359_v37 = vsel %vm1358_vm0, %v1356_v36, -inf }
 0x194   :  { %1360 = vmax.xlane.f32.xlu0 %v1359_v37 }
 0x207   :  { %v1361_v38 = vpop.xlane.xlu0 %1360 }
 0x208   :  { %v1362_v39 = vsub.f32 %v1356_v36, %v1361_v38 }
 0x20a   :  { %v1363_v40 = vmul.f32 1.442695, %v1362_v39 }
 0x20c   :  { %2023 = vpow2.f32 %v1363_v40 }
 0x212   :  { %v2024_v41 = vpop.eup %2023 }
 0x213   :  { %v1365_v42 = vsel %vm1358_vm0, %v2024_v41, 0.0 }
 0x214   :  { %1366 = vadd.xlane.f32.xlu0 %v1365_v42 }
 0x287   :  { %v1367_v43 = vpop.xlane.xlu0 %1366 }
 0x288   :  { %2025 = vlog2.f32 %v1367_v43 }
 0x28e   :  { %v2026_v44 = vpop.eup %2025 }
 0x28f   :  { %v1369_v45 = vmul.f32 0.6931472, %v2026_v44 }
 0x291   :  { %v1370_v46 = vadd.f32 %v1369_v45, %v1361_v38 }
 0x293   :  { %v1371_v47 = vsub.f32 %v1356_v36, %v1370_v46 }
 0x295   :  { %1372 = vst.msk [vmem:[%s2202_s5] sm:$0xff] %vm1358_vm0, %v1371_v47 }
 0x296   :  { %1377 = vsyncpa [#allocation4], 1 }

</bundles_post_ra>
